<compile_context>
chip_gen: v5e
topology: v5e:2x2
jax: 0.10.0
libtpu: 0.0.40
codegen_flags: <defaults>
</compile_context>

<pallas_src>
import functools
import math

import jax
import jax.numpy as jnp
from jax.experimental import pallas as pl
from jax.experimental.pallas import tpu as pltpu


def _trittention_kernel(x_ref, w_ref, b_ref, o_ref, *, num_heads):
    # x_ref block: (TB, S, H); w_ref: (H, 5H) fused [q|k|v|ck|cv]; b_ref: (1, 5H).
    tb, s, h = x_ref.shape
    dh = h // num_heads
    cdt = x_ref.dtype            # MXU feed dtype (bf16 in the fast path)

    # ---- fused projections: one (TB*S, H) @ (H, 5H) MXU matmul, f32 accum.
    x2 = x_ref[...].reshape(tb * s, h)
    proj = jnp.dot(x2, w_ref[...], preferred_element_type=jnp.float32)
    proj = proj + b_ref[...]     # (TB*S, 5H), f32

    # ---- split q/k/v/ck/cv and heads; heads are batched into the leading dim.
    def split_heads(t_idx):
        base = t_idx * h
        heads = [
            proj[:, base + i * dh: base + (i + 1) * dh].reshape(tb, s, dh)
            for i in range(num_heads)
        ]
        # (TB, nh, S, dh) -> (TB*nh, S, dh), cast once for the MXU.
        return jnp.stack(heads, axis=1).reshape(tb * num_heads, s, dh).astype(cdt)

    q, k, v, ck, cv = [split_heads(i) for i in range(5)]

    # ---- cubic attention scores (1/sqrt(dh) already folded into Wq/bq).
    # scores = Q @ K^T            -> (TB*nh, S, S)
    s1 = jnp.einsum('bqd,bkd->bqk', q, k, preferred_element_type=jnp.float32)
    # scores = scores @ cubeK^T   -> (TB*nh, S, S)   (needs S == head_dim)
    s2 = jnp.einsum('bqk,bjk->bqj', s1.astype(cdt), ck,
                    preferred_element_type=jnp.float32)

    # ---- softmax over the last dim, kept in f32; reciprocal on the EUP.
    m = jnp.max(s2, axis=-1, keepdims=True)
    e = jnp.exp(s2 - m)
    p = e * pl.reciprocal(jnp.sum(e, axis=-1, keepdims=True), approx=True)
    # TODO(synk): attention-probs dropout omitted (eval-mode / deterministic).
    # TODO(synk): optional additive attention_mask not plumbed through.

    # ---- context = (P @ V) @ cubeV, batched over (TB*nh).
    ctx = jnp.einsum('bqk,bkd->bqd', p.astype(cdt), v,
                     preferred_element_type=jnp.float32)
    ctx = jnp.einsum('bqk,bkd->bqd', ctx.astype(cdt), cv,
                     preferred_element_type=jnp.float32)   # (TB*nh, S, dh)

    # ---- merge heads back to (TB, S, H) and store full-H rows.
    ctx = ctx.reshape(tb, num_heads, s, dh)
    out = jnp.concatenate([ctx[:, i] for i in range(num_heads)], axis=-1)
    o_ref[...] = out.astype(o_ref.dtype)


def _pack_params(params, num_heads, compute_dtype):
    """Fuse the 5 projection weights/biases and fold in the score scaling."""
    wq, bq, wk, bk, wv, bv, wck, bck, wcv, bcv = params
    h = wq.shape[0]
    dh = h // num_heads
    scale = 1.0 / math.sqrt(dh)
    # Folding 1/sqrt(dh) into the (linear) query projection is exact.
    w_all = jnp.concatenate([wq * scale, wk, wv, wck, wcv], axis=1)  # (H, 5H)
    b_all = jnp.concatenate([bq * scale, bk, bv, bck, bcv], axis=1)  # (1, 5H)
    return w_all.astype(compute_dtype), b_all.astype(compute_dtype)


def trittention_cube(hidden_states, params, *, num_heads,
                     compute_dtype=jnp.bfloat16, batch_block=1):
    B, S, H = hidden_states.shape
    head_dim = H // num_heads
    assert S == head_dim, (
        "TrittentionCube semantics require seq_len == attention_head_size")
    assert B % batch_block == 0, "batch must be divisible by batch_block"

    w_all, b_all = _pack_params(params, num_heads, compute_dtype)
    x = hidden_states.astype(compute_dtype)

    # Advisory cost estimate so XLA schedules around the custom call.
    itm = jnp.dtype(compute_dtype).itemsize
    out_itm = jnp.dtype(hidden_states.dtype).itemsize
    flops = 2 * B * S * H * (5 * H) + 8 * B * num_heads * S * S * S
    transcendentals = B * num_heads * S * S                      # exp
    bytes_accessed = (x.size * itm + w_all.size * itm + b_all.size * itm
                      + B * S * H * out_itm)

    kernel = functools.partial(_trittention_kernel, num_heads=num_heads)
    grid = (B // batch_block,)

    return pl.pallas_call(
        kernel,
        out_shape=jax.ShapeDtypeStruct((B, S, H), hidden_states.dtype),
        grid_spec=pltpu.PrefetchScalarGridSpec(
            num_scalar_prefetch=0,
            grid=grid,
            in_specs=[
                pl.BlockSpec((batch_block, S, H), lambda b: (b, 0, 0)),  # x
                pl.BlockSpec((H, 5 * H), lambda b: (0, 0)),  # fused weights
                pl.BlockSpec((1, 5 * H), lambda b: (0, 0)),  # fused bias
            ],
            out_specs=pl.BlockSpec((batch_block, S, H), lambda b: (b, 0, 0)),
        ),
        compiler_params=pltpu.CompilerParams(
            dimension_semantics=("parallel",),          # megacore over batch
            vmem_limit_bytes=64 * 1024 * 1024,          # > v5e's 16 MiB default
        ),
        cost_estimate=pl.CostEstimate(
            flops=int(flops),
            transcendentals=int(transcendentals),
            bytes_accessed=int(bytes_accessed)),
    )(x, w_all, b_all)


def _reference(hidden_states, params, *, num_heads, compute_dtype):
    """Pure-JAX reference mirroring the PyTorch forward (eval mode, no mask),
    with the same MXU dtype discipline as the kernel (bf16 matmul inputs,
    f32 accumulation, f32 softmax)."""
    B, S, H = hidden_states.shape
    dh = H // num_heads
    w_all, b_all = _pack_params(params, num_heads, compute_dtype)
    x = hidden_states.astype(compute_dtype)

    proj = jnp.dot(x.reshape(B * S, H), w_all,
                   preferred_element_type=jnp.float32) + b_all    # (B*S, 5H) f32
    proj = proj.reshape(B, S, 5, num_heads, dh)
    proj = jnp.transpose(proj, (2, 0, 3, 1, 4)).astype(compute_dtype)  # (5,B,nh,S,dh)
    q, k, v, ck, cv = proj[0], proj[1], proj[2], proj[3], proj[4]

    s = jnp.einsum('bhqd,bhkd->bhqk', q, k, preferred_element_type=jnp.float32)
    s = jnp.einsum('bhqk,bhjk->bhqj', s.astype(compute_dtype), ck,
                   preferred_element_type=jnp.float32)
    p = jax.nn.softmax(s, axis=-1)
    ctx = jnp.einsum('bhqk,bhkd->bhqd', p.astype(compute_dtype), v,
                     preferred_element_type=jnp.float32)
    ctx = jnp.einsum('bhqk,bhkd->bhqd', ctx.astype(compute_dtype), cv,
                     preferred_element_type=jnp.float32)
    ctx = jnp.transpose(ctx, (0, 2, 1, 3)).reshape(B, S, H)
    return ctx.astype(hidden_states.dtype)


if __name__ == "__main__":
    # Small config consistent with the module: hidden=32, heads=4 -> head_dim=8,
    # seq=8 (== head_dim, required by the module's matmul chain), batch=4,
    # two batch elements per grid step (grid of 2 -> still megacore-friendly).
    B, S, H, NH = 4, 8, 32, 4
    BATCH_BLOCK = 2

    key = jax.random.PRNGKey(0)
    keys = jax.random.split(key, 11)
    x = jax.random.normal(keys[0], (B, S, H), dtype=jnp.float32)

    params = []
    for i in range(5):
        w = jax.random.normal(keys[1 + 2 * i], (H, H), jnp.float32) / math.sqrt(H)
        b = jax.random.normal(keys[2 + 2 * i], (1, H), jnp.float32) * 0.01
        params.extend([w, b])
    params = tuple(params)

    out = trittention_cube(x, params, num_heads=NH,
                           compute_dtype=jnp.bfloat16, batch_block=BATCH_BLOCK)
    out = jax.block_until_ready(out)

    ref = _reference(x, params, num_heads=NH, compute_dtype=jnp.bfloat16)
    assert out.shape == (B, S, H)
    # Tolerance covers the approx-reciprocal softmax normalization; matmul
    # dtypes/ordering are mirrored exactly by the reference.
    assert jnp.allclose(out, ref, atol=3e-2, rtol=3e-2), "mismatch vs reference"

    print("KERNEL_OK")
</pallas_src>

<mosaic_0001>
module attributes {stable_mosaic.version = 11 : i64} {
  func.func @_trittention_kernel(%arg0: i32, %arg1: memref<2x8x32xbf16, #tpu.memory_space<vmem>>, %arg2: memref<32x160xbf16, #tpu.memory_space<vmem>>, %arg3: memref<1x160xbf16, #tpu.memory_space<vmem>>, %arg4: memref<2x8x32xf32, #tpu.memory_space<vmem>>) attributes {dimension_semantics = [#tpu.dimension_semantics<parallel>], iteration_bounds = array<i64: 2>, scalar_prefetch = 0 : i64, scratch_operands = 0 : i64, tpu.core_type = #tpu.core_type<tc>, window_params = [{transform_indices = @transform_0, window_bounds = array<i64: 2, 8, 32>}, {pipeline_mode = #tpu.pipeline_mode<synchronous>, transform_indices = @transform_1, window_bounds = array<i64: 32, 160>}, {pipeline_mode = #tpu.pipeline_mode<synchronous>, transform_indices = @transform_2, window_bounds = array<i64: 1, 160>}, {transform_indices = @transform_3, window_bounds = array<i64: 2, 8, 32>}]} {
    %c0 = arith.constant 0 : index
    %c0_0 = arith.constant 0 : index
    %c0_1 = arith.constant 0 : index
    %0 = vector.load %arg1[%c0, %c0_0, %c0_1] : memref<2x8x32xbf16, #tpu.memory_space<vmem>>, vector<2x8x32xbf16>
    %1 = vector.shape_cast %0 : vector<2x8x32xbf16> to vector<16x32xbf16>
    %c0_2 = arith.constant 0 : index
    %c0_3 = arith.constant 0 : index
    %2 = vector.load %arg2[%c0_2, %c0_3] : memref<32x160xbf16, #tpu.memory_space<vmem>>, vector<32x160xbf16>
    %cst = arith.constant dense<0.000000e+00> : vector<16x160xf32>
    %3 = tpu.matmul %1, %2, %cst {dimension_numbers = #tpu.dot_dimension_numbers<[1], [0], [0], [1], [0, 0, 1, 1], [], []>} : vector<16x32xbf16>, vector<32x160xbf16>, vector<16x160xf32> -> vector<16x160xf32>
    %c0_4 = arith.constant 0 : index
    %c0_5 = arith.constant 0 : index
    %4 = vector.load %arg3[%c0_4, %c0_5] : memref<1x160xbf16, #tpu.memory_space<vmem>>, vector<1x160xbf16>
    %5 = arith.extf %4 : vector<1x160xbf16> to vector<1x160xf32>
    %6 = vector.broadcast %5 : vector<1x160xf32> to vector<16x160xf32>
    %7 = arith.addf %3, %6 : vector<16x160xf32>
    %8 = vector.extract_strided_slice %7 {offsets = [0, 0], sizes = [16, 8], strides = [1, 1]} : vector<16x160xf32> to vector<16x8xf32>
    %9 = vector.shape_cast %8 : vector<16x8xf32> to vector<2x8x8xf32>
    %10 = vector.extract_strided_slice %7 {offsets = [0, 8], sizes = [16, 8], strides = [1, 1]} : vector<16x160xf32> to vector<16x8xf32>
    %11 = vector.shape_cast %10 : vector<16x8xf32> to vector<2x8x8xf32>
    %12 = vector.extract_strided_slice %7 {offsets = [0, 16], sizes = [16, 8], strides = [1, 1]} : vector<16x160xf32> to vector<16x8xf32>
    %13 = vector.shape_cast %12 : vector<16x8xf32> to vector<2x8x8xf32>
    %14 = vector.extract_strided_slice %7 {offsets = [0, 24], sizes = [16, 8], strides = [1, 1]} : vector<16x160xf32> to vector<16x8xf32>
    %15 = vector.shape_cast %14 : vector<16x8xf32> to vector<2x8x8xf32>
    %16 = vector.shape_cast %9 : vector<2x8x8xf32> to vector<2x1x8x8xf32>
    %17 = vector.shape_cast %11 : vector<2x8x8xf32> to vector<2x1x8x8xf32>
    %18 = vector.shape_cast %13 : vector<2x8x8xf32> to vector<2x1x8x8xf32>
    %19 = vector.shape_cast %15 : vector<2x8x8xf32> to vector<2x1x8x8xf32>
    %20 = tpu.concatenate %16, %17, %18, %19 in 1 : vector<2x1x8x8xf32>, vector<2x1x8x8xf32>, vector<2x1x8x8xf32>, vector<2x1x8x8xf32> -> vector<2x4x8x8xf32>
    %21 = vector.shape_cast %20 : vector<2x4x8x8xf32> to vector<8x8x8xf32>
    %22 = arith.truncf %21 : vector<8x8x8xf32> to vector<8x8x8xbf16>
    %23 = vector.extract_strided_slice %7 {offsets = [0, 32], sizes = [16, 8], strides = [1, 1]} : vector<16x160xf32> to vector<16x8xf32>
    %24 = vector.shape_cast %23 : vector<16x8xf32> to vector<2x8x8xf32>
    %25 = vector.extract_strided_slice %7 {offsets = [0, 40], sizes = [16, 8], strides = [1, 1]} : vector<16x160xf32> to vector<16x8xf32>
    %26 = vector.shape_cast %25 : vector<16x8xf32> to vector<2x8x8xf32>
    %27 = vector.extract_strided_slice %7 {offsets = [0, 48], sizes = [16, 8], strides = [1, 1]} : vector<16x160xf32> to vector<16x8xf32>
    %28 = vector.shape_cast %27 : vector<16x8xf32> to vector<2x8x8xf32>
    %29 = vector.extract_strided_slice %7 {offsets = [0, 56], sizes = [16, 8], strides = [1, 1]} : vector<16x160xf32> to vector<16x8xf32>
    %30 = vector.shape_cast %29 : vector<16x8xf32> to vector<2x8x8xf32>
    %31 = vector.shape_cast %24 : vector<2x8x8xf32> to vector<2x1x8x8xf32>
    %32 = vector.shape_cast %26 : vector<2x8x8xf32> to vector<2x1x8x8xf32>
    %33 = vector.shape_cast %28 : vector<2x8x8xf32> to vector<2x1x8x8xf32>
    %34 = vector.shape_cast %30 : vector<2x8x8xf32> to vector<2x1x8x8xf32>
    %35 = tpu.concatenate %31, %32, %33, %34 in 1 : vector<2x1x8x8xf32>, vector<2x1x8x8xf32>, vector<2x1x8x8xf32>, vector<2x1x8x8xf32> -> vector<2x4x8x8xf32>
    %36 = vector.shape_cast %35 : vector<2x4x8x8xf32> to vector<8x8x8xf32>
    %37 = arith.truncf %36 : vector<8x8x8xf32> to vector<8x8x8xbf16>
    %38 = vector.extract_strided_slice %7 {offsets = [0, 64], sizes = [16, 8], strides = [1, 1]} : vector<16x160xf32> to vector<16x8xf32>
    %39 = vector.shape_cast %38 : vector<16x8xf32> to vector<2x8x8xf32>
    %40 = vector.extract_strided_slice %7 {offsets = [0, 72], sizes = [16, 8], strides = [1, 1]} : vector<16x160xf32> to vector<16x8xf32>
    %41 = vector.shape_cast %40 : vector<16x8xf32> to vector<2x8x8xf32>
    %42 = vector.extract_strided_slice %7 {offsets = [0, 80], sizes = [16, 8], strides = [1, 1]} : vector<16x160xf32> to vector<16x8xf32>
    %43 = vector.shape_cast %42 : vector<16x8xf32> to vector<2x8x8xf32>
    %44 = vector.extract_strided_slice %7 {offsets = [0, 88], sizes = [16, 8], strides = [1, 1]} : vector<16x160xf32> to vector<16x8xf32>
    %45 = vector.shape_cast %44 : vector<16x8xf32> to vector<2x8x8xf32>
    %46 = vector.shape_cast %39 : vector<2x8x8xf32> to vector<2x1x8x8xf32>
    %47 = vector.shape_cast %41 : vector<2x8x8xf32> to vector<2x1x8x8xf32>
    %48 = vector.shape_cast %43 : vector<2x8x8xf32> to vector<2x1x8x8xf32>
    %49 = vector.shape_cast %45 : vector<2x8x8xf32> to vector<2x1x8x8xf32>
    %50 = tpu.concatenate %46, %47, %48, %49 in 1 : vector<2x1x8x8xf32>, vector<2x1x8x8xf32>, vector<2x1x8x8xf32>, vector<2x1x8x8xf32> -> vector<2x4x8x8xf32>
    %51 = vector.shape_cast %50 : vector<2x4x8x8xf32> to vector<8x8x8xf32>
    %52 = arith.truncf %51 : vector<8x8x8xf32> to vector<8x8x8xbf16>
    %53 = vector.extract_strided_slice %7 {offsets = [0, 96], sizes = [16, 8], strides = [1, 1]} : vector<16x160xf32> to vector<16x8xf32>
    %54 = vector.shape_cast %53 : vector<16x8xf32> to vector<2x8x8xf32>
    %55 = vector.extract_strided_slice %7 {offsets = [0, 104], sizes = [16, 8], strides = [1, 1]} : vector<16x160xf32> to vector<16x8xf32>
    %56 = vector.shape_cast %55 : vector<16x8xf32> to vector<2x8x8xf32>
    %57 = vector.extract_strided_slice %7 {offsets = [0, 112], sizes = [16, 8], strides = [1, 1]} : vector<16x160xf32> to vector<16x8xf32>
    %58 = vector.shape_cast %57 : vector<16x8xf32> to vector<2x8x8xf32>
    %59 = vector.extract_strided_slice %7 {offsets = [0, 120], sizes = [16, 8], strides = [1, 1]} : vector<16x160xf32> to vector<16x8xf32>
    %60 = vector.shape_cast %59 : vector<16x8xf32> to vector<2x8x8xf32>
    %61 = vector.shape_cast %54 : vector<2x8x8xf32> to vector<2x1x8x8xf32>
    %62 = vector.shape_cast %56 : vector<2x8x8xf32> to vector<2x1x8x8xf32>
    %63 = vector.shape_cast %58 : vector<2x8x8xf32> to vector<2x1x8x8xf32>
    %64 = vector.shape_cast %60 : vector<2x8x8xf32> to vector<2x1x8x8xf32>
    %65 = tpu.concatenate %61, %62, %63, %64 in 1 : vector<2x1x8x8xf32>, vector<2x1x8x8xf32>, vector<2x1x8x8xf32>, vector<2x1x8x8xf32> -> vector<2x4x8x8xf32>
    %66 = vector.shape_cast %65 : vector<2x4x8x8xf32> to vector<8x8x8xf32>
    %67 = arith.truncf %66 : vector<8x8x8xf32> to vector<8x8x8xbf16>
    %68 = vector.extract_strided_slice %7 {offsets = [0, 128], sizes = [16, 8], strides = [1, 1]} : vector<16x160xf32> to vector<16x8xf32>
    %69 = vector.shape_cast %68 : vector<16x8xf32> to vector<2x8x8xf32>
    %70 = vector.extract_strided_slice %7 {offsets = [0, 136], sizes = [16, 8], strides = [1, 1]} : vector<16x160xf32> to vector<16x8xf32>
    %71 = vector.shape_cast %70 : vector<16x8xf32> to vector<2x8x8xf32>
    %72 = vector.extract_strided_slice %7 {offsets = [0, 144], sizes = [16, 8], strides = [1, 1]} : vector<16x160xf32> to vector<16x8xf32>
    %73 = vector.shape_cast %72 : vector<16x8xf32> to vector<2x8x8xf32>
    %74 = vector.extract_strided_slice %7 {offsets = [0, 152], sizes = [16, 8], strides = [1, 1]} : vector<16x160xf32> to vector<16x8xf32>
    %75 = vector.shape_cast %74 : vector<16x8xf32> to vector<2x8x8xf32>
    %76 = vector.shape_cast %69 : vector<2x8x8xf32> to vector<2x1x8x8xf32>
    %77 = vector.shape_cast %71 : vector<2x8x8xf32> to vector<2x1x8x8xf32>
    %78 = vector.shape_cast %73 : vector<2x8x8xf32> to vector<2x1x8x8xf32>
    %79 = vector.shape_cast %75 : vector<2x8x8xf32> to vector<2x1x8x8xf32>
    %80 = tpu.concatenate %76, %77, %78, %79 in 1 : vector<2x1x8x8xf32>, vector<2x1x8x8xf32>, vector<2x1x8x8xf32>, vector<2x1x8x8xf32> -> vector<2x4x8x8xf32>
    %81 = vector.shape_cast %80 : vector<2x4x8x8xf32> to vector<8x8x8xf32>
    %82 = arith.truncf %81 : vector<8x8x8xf32> to vector<8x8x8xbf16>
    "tpu.trace_start"() <{level = 10 : i32, message = "bqd,bkd->bqk"}> : () -> ()
    %cst_6 = arith.constant dense<0.000000e+00> : vector<8x8x8xf32>
    %83 = tpu.matmul %22, %37, %cst_6 {dimension_numbers = #tpu.dot_dimension_numbers<[2], [2], [1], [1], [0, 0, 0, 1, 1, 1], [0], [0]>} : vector<8x8x8xbf16>, vector<8x8x8xbf16>, vector<8x8x8xf32> -> vector<8x8x8xf32>
    "tpu.trace_stop"() : () -> ()
    %84 = arith.truncf %83 : vector<8x8x8xf32> to vector<8x8x8xbf16>
    "tpu.trace_start"() <{level = 10 : i32, message = "bqk,bjk->bqj"}> : () -> ()
    %cst_7 = arith.constant dense<0.000000e+00> : vector<8x8x8xf32>
    %85 = tpu.matmul %84, %67, %cst_7 {dimension_numbers = #tpu.dot_dimension_numbers<[2], [2], [1], [1], [0, 0, 0, 1, 1, 1], [0], [0]>} : vector<8x8x8xbf16>, vector<8x8x8xbf16>, vector<8x8x8xf32> -> vector<8x8x8xf32>
    "tpu.trace_stop"() : () -> ()
    %cst_8 = arith.constant dense<0xFF800000> : vector<8x8xf32>
    %86 = vector.multi_reduction <maximumf>, %85, %cst_8 [2] : vector<8x8x8xf32> to vector<8x8xf32>
    %87 = vector.shape_cast %86 : vector<8x8xf32> to vector<8x8x1xf32>
    %88 = vector.broadcast %87 : vector<8x8x1xf32> to vector<8x8x8xf32>
    %89 = arith.subf %85, %88 : vector<8x8x8xf32>
    %90 = math.exp %89 : vector<8x8x8xf32>
    %cst_9 = arith.constant dense<0.000000e+00> : vector<8x8xf32>
    %91 = vector.multi_reduction <add>, %90, %cst_9 [2] : vector<8x8x8xf32> to vector<8x8xf32>
    %92 = vector.shape_cast %91 : vector<8x8xf32> to vector<8x8x1xf32>
    %93 = tpu.reciprocal %92 {approx = true} : vector<8x8x1xf32> -> vector<8x8x1xf32>
    %94 = vector.broadcast %93 : vector<8x8x1xf32> to vector<8x8x8xf32>
    %95 = arith.mulf %90, %94 : vector<8x8x8xf32>
    %96 = arith.truncf %95 : vector<8x8x8xf32> to vector<8x8x8xbf16>
    "tpu.trace_start"() <{level = 10 : i32, message = "bqk,bkd->bqd"}> : () -> ()
    %cst_10 = arith.constant dense<0.000000e+00> : vector<8x8x8xf32>
    %97 = tpu.matmul %96, %52, %cst_10 {dimension_numbers = #tpu.dot_dimension_numbers<[2], [1], [1], [2], [0, 0, 0, 1, 1, 2], [0], [0]>} : vector<8x8x8xbf16>, vector<8x8x8xbf16>, vector<8x8x8xf32> -> vector<8x8x8xf32>
    "tpu.trace_stop"() : () -> ()
    %98 = arith.truncf %97 : vector<8x8x8xf32> to vector<8x8x8xbf16>
    "tpu.trace_start"() <{level = 10 : i32, message = "bqk,bkd->bqd"}> : () -> ()
    %cst_11 = arith.constant dense<0.000000e+00> : vector<8x8x8xf32>
    %99 = tpu.matmul %98, %82, %cst_11 {dimension_numbers = #tpu.dot_dimension_numbers<[2], [1], [1], [2], [0, 0, 0, 1, 1, 2], [0], [0]>} : vector<8x8x8xbf16>, vector<8x8x8xbf16>, vector<8x8x8xf32> -> vector<8x8x8xf32>
    "tpu.trace_stop"() : () -> ()
    %100 = vector.shape_cast %99 : vector<8x8x8xf32> to vector<2x4x8x8xf32>
    %101 = vector.extract_strided_slice %100 {offsets = [0, 0, 0, 0], sizes = [2, 1, 8, 8], strides = [1, 1, 1, 1]} : vector<2x4x8x8xf32> to vector<2x1x8x8xf32>
    %102 = vector.shape_cast %101 : vector<2x1x8x8xf32> to vector<2x8x8xf32>
    %103 = vector.extract_strided_slice %100 {offsets = [0, 1, 0, 0], sizes = [2, 1, 8, 8], strides = [1, 1, 1, 1]} : vector<2x4x8x8xf32> to vector<2x1x8x8xf32>
    %104 = vector.shape_cast %103 : vector<2x1x8x8xf32> to vector<2x8x8xf32>
    %105 = vector.extract_strided_slice %100 {offsets = [0, 2, 0, 0], sizes = [2, 1, 8, 8], strides = [1, 1, 1, 1]} : vector<2x4x8x8xf32> to vector<2x1x8x8xf32>
    %106 = vector.shape_cast %105 : vector<2x1x8x8xf32> to vector<2x8x8xf32>
    %107 = vector.extract_strided_slice %100 {offsets = [0, 3, 0, 0], sizes = [2, 1, 8, 8], strides = [1, 1, 1, 1]} : vector<2x4x8x8xf32> to vector<2x1x8x8xf32>
    %108 = vector.shape_cast %107 : vector<2x1x8x8xf32> to vector<2x8x8xf32>
    %109 = tpu.concatenate %102, %104, %106, %108 in 2 : vector<2x8x8xf32>, vector<2x8x8xf32>, vector<2x8x8xf32>, vector<2x8x8xf32> -> vector<2x8x32xf32>
    %c0_12 = arith.constant 0 : index
    %c0_13 = arith.constant 0 : index
    %c0_14 = arith.constant 0 : index
    %110 = vector.load %arg4[%c0_12, %c0_13, %c0_14] : memref<2x8x32xf32, #tpu.memory_space<vmem>>, vector<2x8x32xf32>
    tpu.vector_store %arg4[%c0_12, %c0_13, %c0_14], %109 {strides = array<i32>} : memref<2x8x32xf32, #tpu.memory_space<vmem>>, vector<2x8x32xf32>,
    return
  }
  func.func @transform_0(%arg0: i32) -> (i32, i32, i32) {
    %c0_i32 = arith.constant 0 : i32
    %c0_i32_0 = arith.constant 0 : i32
    %c0_i32_1 = arith.constant 0 : i32
    return %arg0, %c0_i32, %c0_i32_0 : i32, i32, i32
  }
  func.func @transform_1(%arg0: i32) -> (i32, i32) {
    %c0_i32 = arith.constant 0 : i32
    %c0_i32_0 = arith.constant 0 : i32
    %c0_i32_1 = arith.constant 0 : i32
    return %c0_i32, %c0_i32_0 : i32, i32
  }
  func.func @transform_2(%arg0: i32) -> (i32, i32) {
    %c0_i32 = arith.constant 0 : i32
    %c0_i32_0 = arith.constant 0 : i32
    %c0_i32_1 = arith.constant 0 : i32
    return %c0_i32, %c0_i32_0 : i32, i32
  }
  func.func @transform_3(%arg0: i32) -> (i32, i32, i32) {
    %c0_i32 = arith.constant 0 : i32
    %c0_i32_0 = arith.constant 0 : i32
    %c0_i32_1 = arith.constant 0 : i32
    return %arg0, %c0_i32, %c0_i32_0 : i32, i32, i32
  }
}

</mosaic_0001>

<bundles_post_ra>
// kernel: tpu_custom_call.1
= control target key start
LH: loop header
LB: loop body
LE: loop exit
PB: predicated region body
PF: predicated region fallthrough
CT: control target
= control target key end

     0   :  { %8 = vsyncpa [#allocation3], 0  ;;  %s2067_s0 = inlined_call_operand.hbm [shape: bf16[4,8,32], index: 0, kind: input, shape index: {}]   ;;  %s2068_s1 = inlined_call_operand.hbm [shape: bf16[32,160], index: 1, kind: input, shape index: {}]   ;;  %s2069_s2 = inlined_call_operand.hbm [shape: bf16[1,160], index: 2, kind: input, shape index: {}]   ;;  %s2070_s3 = inlined_call_operand.hbm [shape: f32[4,8,32], index: 3, kind: output, shape index: {}]  }
   0x1   :  { %10 = vsyncpa [#allocation3 + $0x1], 0 }
   0x2   :  { %11 = vsyncpa [#allocation6], 0 }
   0x3   :  { %12 = vsyncpa [#allocation4], 0 }
   0x4   :  { %14 = vsyncpa [#allocation4 + $0x1], 0  ;;  %s1679_s12 = smov 0   ;;  %s1681_s13 = smov 0  }
   0x5   :  { %s1683_s14 = smov 0   ;;  %s1685_s15 = smov 0  }
   0x6 LB: > { %s1700_s16 = sadd.s32 4294967295, %s1641_s15   ;;  %s1289_s17 = sadd.s32 4294967294, %s1641_s15   ;;  %s1641_s15 = sphi %s1685_s15, %s2080_s15   ;;  %s1637_s14 = sphi %s1683_s14, %s2079_s14   ;;  %s1633_s13 = sphi %s1681_s13, %s2078_s13   ;;  %s1629_s12 = sphi %s1679_s12, %s2077_s12  }
   0x7   : > { %p40_p0 = scmp.ne.s32.totalorder %s1633_s13, %s1629_s12  ;;  %p41_p1 = scmp.eq.s32.totalorder %s1700_s16, 0 }
   0x8   : > { %p106_p2 = scmp.eq.s32.totalorder %s1700_s16, 1  ;;  %p112_p3 = scmp.eq.s32.totalorder %s1289_s17, 1 }
   0x9   : > { %p1709_p4 = por %p41_p1, %p40_p0  ;;  %p1290_p5 = scmp.ge.s32.totalorder %s1641_s15, 1 }
   0xa   : > { %p1714_p6 = por %p112_p3, %p40_p0  ;;  %p119_p7 = scmp.lt.s32.totalorder %s1641_s15, 3 }
   0xb   : > { %s130_s22 = sshll.u32 %s2068_s1, 4  ;;  %s1643_s24 = smov [#allocation5]   ;;  %s131_s22 = int_to_ptr.hbm [resolvable:$true] %s130_s22 }
   0xc   : > { %p1722_p8 = pnand %p1290_p5, %p119_p7  ;;  %s132_s25 = sshll.u32 %s1643_s24, 4  ;;  %s133_s25 = int_to_ptr.vmem [resolvable:$true] %s132_s25 }
   0xd   : > { %s145_s28 = sshll.u32 %s2069_s2, 4  ;;  %s1644_s29 = smov 128   ;;  %s146_s28 = int_to_ptr.hbm [resolvable:$true] %s145_s28 }
   0xe   : > { %p1380_p9 = pneg %p1722_p8  ;;  %s1645_s30 = smov 8  }
   0xf   : > { %s1646_s4 = smov [#allocation7]   ;;  %s1735_s6 = sadd.s32 1, %s1641_s15  }
  0x10   : > { %p1381_p10 = pnand %p1380_p9, %p41_p1  ;;  %s147_s5 = sshll.u32 %s1646_s4, 4  ;;  %s148_s5 = int_to_ptr.vmem [resolvable:$true] %s147_s5 }
  0x11   : > { %s27_s7 = sadd.s32 1, %s1637_s14  ;;  %s24_s8 = ssub.s32 %s1641_s15, %s1735_s6 }
  0x12   : > { %1383 = dma.hbm_to_vmem [thread:$0]  (!%p1381_p10), %s131_s22, 512, %s133_s25, [#allocation6], %s1644_s29, %s1644_s29, %s1645_s30  }
  0x13   : > { %1386 = dma.hbm_to_vmem [thread:$0]  (!%p1381_p10), %s146_s28, 32, %s148_s5, [#allocation6]  }
  0x14   : > { %p34_p12 = scmp.ne.s32.totalorder %s1637_s14, %s1633_s13  ;;  %p25_p13 = scmp.eq.s32.totalorder %s24_s8, 0 }
  0x15   : > { %p35_p0 = scmp.eq.s32.totalorder %s1641_s15, 0  ;;  %p1397_p5 = scmp.lt.s32.totalorder %s1641_s15, 2 }
  0x16   : > { %p1745_p3 = por %p106_p2, %p34_p12  ;;  %s158_s11 = sand.u32 1, %s1637_s14  }
  0x17   : > { %s1751_s10 = scalar_select %p25_p13, %s1637_s14, %s27_s7  }
  0x18   : > { %p36_p7 = por %p35_p0, %p34_p12  ;;  %s1294_s17 = sshll.u32 %s158_s11, 3 }
  0x19   : > { %s1361_s20 = sshll.u32 %s1641_s15, 3  ;;  %s162_s25 = scalar_lea.vmem [#allocation2], %s1294_s17 }
  0x1a   : > { %s167_s24 = scalar_lea.hbm %s2067_s0, %s1361_s20  ;;  %s170_s26 = sshll.u32 %s162_s25, 4  ;;  %s171_s26 = int_to_ptr.vmem [resolvable:$true] %s170_s26 }
  0x1b   : > { %s168_s27 = sshll.u32 %s167_s24, 4  ;;  %p1758_p2 = pnand %p1397_p5, %p36_p7  ;;  %s169_s27 = int_to_ptr.hbm [resolvable:$true] %s168_s27 }
  0x1c   : > { %s159_s29 = scalar_lea.sflag [#allocation3], %s158_s11  ;;  %s1541_s30 = sshra.s32 %s169_s27, 4  ;;  %s1542_s30 = int_to_ptr.hbm [resolvable:$true] %s1541_s30 }
  0x1d   : > { %s1543_s4 = scalar_lea.hbm %s1542_s30, 8  ;;  %p1545_p10 = pneg %p1758_p2 }
  0x1e   : > { %p1544_p9 = scmp.ne.s32.totalorder %s1542_s30, %s1543_s4  ;;  %s1548_s8 = scalar_lea.hbm %s2067_s0, 16 }
  0x1f   : > { %p1549_p0 = scmp.lt.s32.totalorder %s1542_s30, %s2067_s0  ;;  %p1550_p5 = scmp.lt.s32.totalorder %s1548_s8, %s1543_s4 }
  0x20   : > { %p1546_p12 = pnand %p1545_p10, %p1544_p9 }
  0x21   : > { %p1551_p7 = por %p1550_p5, %p1549_p0 }
  0x22   : > { %p1547_p13 = pneg %p1546_p12 }
  0x24   : > { %p1552_p11 = pnand %p1551_p7, %p1547_p13 }
  0x26   : > { %1555 = shalt.err (!%p1552_p11)
}
  0x27   : > { %s1647_s11 = smov 64   ;;  %s1648_s21 = smov 4  }
  0x28   : > { %1390 = dma.hbm_to_vmem [thread:$0]  (!%p1758_p2), %s169_s27, 128, %s171_s26, %s159_s29, %s1647_s11, %s1647_s11, %s1648_s21  }
  0x29   : > { %182 = sbr.rel (%p1722_p8) target bundleno = 1433 (0x599), region = 32  ;;  %s1775_s22 = sand.u32 (!%p1722_p8), 1, %s1633_s13  }
  0x2a   : > { %s1298_s24 = sshll.u32 (!%p1722_p8), %s1775_s22, 3  ;;  %s185_s25 = scalar_lea.sflag (!%p1722_p8), [#allocation3], %s1775_s22 }
  0x2b   : > { %s188_s30 = scalar_lea.vmem (!%p1722_p8), [#allocation2], %s1298_s24 }
  0x2e   : > { %1616 = dma.done.wait (%p1709_p4), %s185_s25, 128  }
  0x2f   : > { %1618 = vsyncadd (%p1709_p4), %s185_s25, 4294967168 }
  0x30   : > { %1620 = dma.done.wait (%p41_p1), [#allocation6], 544  }
  0x31   : > { %1622 = vsyncadd (%p41_p1), [#allocation6], 4294966752  ;;  %v1316_v0 = vld [vmem:[#allocation5 + $0x10] sm:$0xf]  ;;  %v1366_v1 = vld [vmem:[#allocation5 + $0x14] sm:$0xf0] }
  0x32   : > { %v1308_v2 = vld [vmem:[#allocation5] sm:$0xf]  ;;  %v1317_v3 = vor.u32 %v1366_v1, %v1316_v0  ;;  %v1364_v4 = vld [vmem:[#allocation5 + $0x4] sm:$0xf0]  ;;  %v1787_v6 = vld [vmem:[%s188_s30] sm:$0xff]  ;;  %vm265_vm0 = vcmask 261120  }
  0x33   : > { %v1309_v5 = vor.u32 %v1364_v4, %v1308_v2  ;;  %v1791_v7 = vld [vmem:[#allocation7] sm:$0x3]  ;;  %s1649_s18 = smov 112   ;;  %s1650_s23 = smov 120   ;;  %v1365_v45 = vld [vmem:[#allocation5 + $0x14] sm:$0xf] }
  0x34   : > { %275 = vmatpush.bf16.msra.mxu0 %v1317_v3  ;;  %v232_v8 = vunpack.c.l.bf16 %v1791_v7  ;;  %s1651_s26 = smov 104   ;;  %s1652_s27 = smov 96   ;;  %v1318_v46 = vld [vmem:[#allocation5 + $0x18] sm:$0xf0]  ;;  %v1363_v48 = vld [vmem:[#allocation5 + $0x4] sm:$0xf] }
  0x35   : > { %s1653_s28 = smov 32   ;;  %s1654_s29 = smov 64   ;;  %v1321_v47 = vor.u32 %v1365_v45, %v1318_v46  ;;  %v1310_v49 = vld [vmem:[#allocation5 + $0x8] sm:$0xf0]  ;;  %vm358_vm1 = vcmask 64512   ;;  %vm823_vm2 = vcmask 1043456  }
  0x36   : > { %v234_v9 = vperm.slane %v232_v8, 0  ;;  %v1313_v50 = vor.u32 %v1363_v48, %v1310_v49  ;;  %s1655_s4 = smov 16   ;;  %s1656_s5 = smov 24   ;;  %vm1173_vm3 = vcmask 130048   ;;  %vm1176_vm4 = vcmask 195584  }
  0x37   : > { %289 = vmatpush.bf16.msra.mxu1 %v1321_v47  ;;  %s1657_s7 = smov 8   ;;  %s1301_s8 = sshll.u32 %s1775_s22, 4 }
  0x38   : > { %276 = vmatpush.bf16.msra.mxu0 %v1309_v5  ;;  %v238_v10 = vperm.slane %v234_v9, 0  ;;  %s221_s17 = scalar_lea.vmem [#allocation8], %s1301_s8  ;;  %s1367_s20 = sshll.u32 %s1700_s16, 4 }
  0x39   : > { %s1193_s24 = scalar_lea.hbm %s2070_s3, %s1367_s20  ;;  %s1194_s25 = sshll.u32 %s221_s17, 4  ;;  %s1195_s25 = int_to_ptr.vmem [resolvable:$true] %s1194_s25 }
  0x3a   : > { %s1196_s30 = sshll.u32 %s1193_s24, 4  ;;  %s1182_s16 = scalar_lea.sflag [#allocation4], %s1775_s22  ;;  %s1197_s30 = int_to_ptr.hbm [resolvable:$true] %s1196_s30 }
  0x3b   : > { %1322 = vmatmul.msk.bf16.vlgmr.msra.gmra.mxu0 %vm265_vm0, %v1787_v6  ;;  %290 = vmatpush.bf16.msra.mxu1 %v1313_v50 }
  0x3e   : > { %1323 = vmatmul.msk.bf16.vlgmr.msra.gmra.mxu1 %vm265_vm0, %v1787_v6 }
  0xb8   : > { %v278_v11 = vpop.f32.mrf.mxu0 }
  0xb9   : > { %v279_v12 = vadd.f32 %v278_v11, %v238_v10 }
  0xbb   : > { %305 = vrot.lane.b32.xlu1 %v279_v12, %s1649_s18  ;;  %299 = vrot.lane.b32.xlu0 %v279_v12, %s1650_s23  ;;  %v1824_v37 = vpack.c.bf16 %v279_v12, %v279_v12 }
  0xbd   : > { %v354_v39 = vunpack.c.l.b16 %v1824_v37 }
  0xbf   : > { %v1836_v41 = vpack.c.b16 %v354_v39, %v354_v39 }
  0xc0   : > { %v280_v13 = vpop.f32.mrf.mxu0 }
  0xc1   : > { %v281_v14 = vadd.f32 %v280_v13, %v238_v10 }
  0xc3   : > { %307 = vrot.lane.b32.xlu2 %v281_v14, %s1649_s18  ;;  %311 = vrot.lane.b32.xlu1 %v279_v12, %s1651_s26  ;;  %v1838_v42 = vpack.c.bf16 %v281_v14, %v281_v14 }
  0xc4   : > { %301 = vrot.lane.b32.xlu0 %v281_v14, %s1650_s23 }
  0xc5   : > { %v451_v43 = vunpack.c.l.b16 %v1838_v42 }
  0xc7   : > { %v1845_v44 = vpack.c.b16 %v451_v43, %v451_v43 }
  0xcb   : > { %313 = vrot.lane.b32.xlu2 %v281_v14, %s1651_s26 }
 0x11d   : > { %v308_v15 = vpop.permute.xlu2 %307 }
 0x11e   : > { %v323_v22 = vpack.c.bf16 %v308_v15, %v308_v15 }
 0x120   : > { %v499_v26 = vunpack.c.l.b16 %v323_v22 }
 0x122   : > { %v1816_v33 = vpack.c.b16 %v499_v26, %v499_v26  ;;  %v1892_v26 = vpop.f32.mrf.mxu1 }
 0x125   : > { %v314_v29 = vpop.permute.xlu2 %313 }
 0x126   : > { %v1818_v34 = vpack.c.bf16 %v314_v29, %v314_v29 }
 0x128   : > { %v523_v38 = vunpack.c.l.b16 %v1818_v34 }
 0x12a   : > { %v1834_v40 = vpack.c.b16 %v523_v38, %v523_v38  ;;  %v1895_v29 = vpop.f32.mrf.mxu1 }
 0x12d   : > { %v306_v16 = vpop.permute.xlu1 %305  ;;  %v300_v17 = vpop.permute.xlu0 %299 }
 0x12e   : > { %v1802_v18 = vpack.c.bf16 %v306_v16, %v306_v16  ;;  %v1804_v19 = vpack.c.bf16 %v300_v17, %v300_v17 }
 0x130   : > { %v403_v20 = vunpack.c.l.b16 %v1802_v18  ;;  %v379_v21 = vunpack.c.l.b16 %v1804_v19 }
 0x132   : > { %v404_v23 = vpack.c.b16 %v403_v20, %v403_v20  ;;  %v380_v24 = vpack.c.b16 %v379_v21, %v379_v21 }
 0x134   : > { %405 = vrot.lane.b32.xlu2 %v404_v23, %s1652_s27  ;;  %381 = vrot.lane.b32.xlu0 %v380_v24, %s1652_s27 }
 0x135   : > { %v312_v25 = vpop.permute.xlu1 %311 }
 0x136   : > { %v1810_v27 = vpack.c.bf16 %v312_v25, %v312_v25  ;;  %v302_v28 = vpop.permute.xlu0 %301 }
 0x137   : > { %v1812_v30 = vpack.c.bf16 %v302_v28, %v302_v28 }
 0x138   : > { %v427_v31 = vunpack.c.l.b16 %v1810_v27 }
 0x139   : > { %v475_v32 = vunpack.c.l.b16 %v1812_v30 }
 0x13a   : > { %v1820_v35 = vpack.c.b16 %v427_v31, %v427_v31 }
 0x13b   : > { %v1822_v36 = vpack.c.b16 %v475_v32, %v475_v32 }
 0x13c   : > { %501 = vrot.lane.b32.xlu2 %v1816_v33, %s1652_s27  ;;  %429 = vrot.lane.b32.xlu0 %v1820_v35, %s1652_s27 }
 0x13d   : > { %477 = vrot.lane.b32.xlu1 %v1822_v36, %s1652_s27 }
 0x144   : > { %575 = vrot.lane.b32.xlu2 %v380_v24, %s1653_s28  ;;  %525 = vrot.lane.b32.xlu0 %v1834_v40, %s1652_s27 }
 0x145   : > { %356 = vrot.lane.b32.xlu1 %v1836_v41, %s1652_s27 }
 0x14c   : > { %617 = vrot.lane.b32.xlu2 %v1820_v35, %s1653_s28  ;;  %659 = vrot.lane.b32.xlu0 %v1822_v36, %s1653_s28 }
 0x14d   : > { %453 = vrot.lane.b32.xlu1 %v1845_v44, %s1652_s27 }
 0x154   : > { %701 = vrot.lane.b32.xlu2 %v1834_v40, %s1653_s28  ;;  %680 = vrot.lane.b32.xlu0 %v1816_v33, %s1653_s28 }
 0x155   : > { %596 = vrot.lane.b32.xlu1 %v404_v23, %s1653_s28 }
 0x15c   : > { %861 = vrot.lane.b32.xlu2 %v404_v23, %s1654_s29  ;;  %638 = vrot.lane.b32.xlu0 %v1845_v44, %s1653_s28 }
 0x15d   : > { %554 = vrot.lane.b32.xlu1 %v1836_v41, %s1653_s28  ;;  %s1591_s28 = scalar_lea.hbm %s2070_s3, 32 }
 0x164   : > { %840 = vrot.lane.b32.xlu0 %v380_v24, %s1654_s29 }
 0x18e   : > { %v406_v51 = vpop.permute.xlu2 %405 }
 0x18f   : > { %v411_v52 = vsel %vm358_vm1, %v406_v51, 0 }
 0x190   : > { %420 = vmatpush.bf16.xpose.msrb.mxu0 %v411_v52 }
 0x196   : > { %v502_v53 = vpop.permute.xlu2 %501 }
 0x197   : > { %v507_v54 = vsel %vm358_vm1, %v502_v53, 0  ;;  %1326 = vmatmul.msk.bf16.vlgmr.msrb.gmra.mxu0 %vm358_vm1, %v1802_v18 }
 0x198   : > { %516 = vmatpush.bf16.xpose.msra.mxu0 %v507_v54 }
 0x19e   : > { %v576_v57 = vpop.permute.xlu2 %575 }
 0x19f   : > { %v581_v62 = vsel %vm358_vm1, %v576_v57, 0 }
 0x1a6   : > { %v382_v55 = vpop.permute.xlu0 %381  ;;  %v618_v63 = vpop.permute.xlu2 %617 }
 0x1a7   : > { %1330 = vmatmul.msk.bf16.vlgmr.msra.gmra.mxu0 %vm358_vm1, %v323_v22  ;;  %v387_v56 = vsel %vm358_vm1, %v382_v55, 0  ;;  %v623_v3 = vsel %vm358_vm1, %v618_v63, 0 }
 0x1a8   : > { %396 = vmatpush.bf16.xpose.msra.mxu3 %v387_v56 }
 0x1ae   : > { %v430_v58 = vpop.permute.xlu0 %429  ;;  %v702_v11 = vpop.permute.xlu2 %701 }
 0x1af   : > { %v478_v59 = vpop.permute.xlu1 %477  ;;  %1325 = vmatmul.msk.bf16.vlgmr.msra.gmra.mxu3 %vm358_vm1, %v1804_v19  ;;  %v435_v60 = vsel %vm358_vm1, %v430_v58, 0  ;;  %v707_v13 = vsel %vm358_vm1, %v702_v11, 0 }
 0x1b0   : > { %444 = vmatpush.bf16.xpose.msrb.mxu1 %v435_v60  ;;  %v483_v61 = vsel %vm358_vm1, %v478_v59, 0 }
 0x1b1   : > { %492 = vmatpush.bf16.xpose.msrb.mxu3 %v483_v61 }
 0x1b6   : > { %v526_v0 = vpop.permute.xlu0 %525  ;;  %v862_v21 = vpop.permute.xlu2 %861 }
 0x1b7   : > { %v531_v1 = vsel %vm358_vm1, %v526_v0, 0  ;;  %v357_v2 = vpop.permute.xlu1 %356  ;;  %1327 = vmatmul.msk.bf16.vlgmr.msrb.gmra.mxu1 %vm358_vm1, %v1810_v27  ;;  %v867_v24 = vsel %vm823_vm2, %v862_v21, 0 }
 0x1b8   : > { %v363_v4 = vsel %vm358_vm1, %v357_v2, 0  ;;  %540 = vmatpush.bf16.xpose.msra.mxu1 %v531_v1 }
 0x1b9   : > { %590 = vmatpush.bf16.xpose.msra.mxu3 %v581_v62  ;;  %372 = vmatpush.bf16.xpose.msra.mxu2 %v363_v4 }
 0x1be   : > { %v660_v5 = vpop.permute.xlu0 %659 }
 0x1bf   : > { %v665_v6 = vsel %vm358_vm1, %v660_v5, 0  ;;  %v454_v9 = vpop.permute.xlu1 %453  ;;  %1329 = vmatmul.msk.bf16.vlgmr.msrb.gmra.mxu3 %vm358_vm1, %v1812_v30 }
 0x1c0   : > { %632 = vmatpush.bf16.xpose.msrb.mxu1 %v623_v3  ;;  %1324 = vmatmul.msk.bf16.vlgmr.msra.gmra.mxu2 %vm358_vm1, %v1824_v37  ;;  %v459_v10 = vsel %vm358_vm1, %v454_v9, 0 }
 0x1c1   : > { %674 = vmatpush.bf16.xpose.msrb.mxu3 %v665_v6  ;;  %468 = vmatpush.bf16.xpose.msrb.mxu2 %v459_v10 }
 0x1c6   : > { %v681_v12 = vpop.permute.xlu0 %680 }
 0x1c7   : > { %v686_v14 = vsel %vm358_vm1, %v681_v12, 0  ;;  %v597_v15 = vpop.permute.xlu1 %596  ;;  %1331 = vmatmul.msk.bf16.vlgmr.msra.gmra.mxu1 %vm358_vm1, %v1818_v34 }
 0x1c8   : > { %v602_v16 = vsel %vm358_vm1, %v597_v15, 0  ;;  %716 = vmatpush.bf16.xpose.msra.mxu1 %v707_v13 }
 0x1c9   : > { %611 = vmatpush.bf16.xpose.msrb.mxu0 %v602_v16 }
 0x1ce   : > { %v639_v17 = vpop.permute.xlu0 %638 }
 0x1cf   : > { %v644_v18 = vsel %vm358_vm1, %v639_v17, 0  ;;  %v555_v19 = vpop.permute.xlu1 %554 }
 0x1d0   : > { %v560_v20 = vsel %vm358_vm1, %v555_v19, 0  ;;  %1328 = vmatmul.msk.bf16.vlgmr.msrb.gmra.mxu2 %vm358_vm1, %v1838_v42 }
 0x1d1   : > { %695 = vmatpush.bf16.xpose.msra.mxu0 %v686_v14  ;;  %569 = vmatpush.bf16.xpose.msra.mxu2 %v560_v20 }
 0x1d6   : > { %v841_v31 = vpop.permute.xlu0 %840 }
 0x1d7   : > { %v846_v38 = vsel %vm823_vm2, %v841_v31, 0 }
 0x1d9   : > { %653 = vmatpush.bf16.xpose.msrb.mxu2 %v644_v18 }
 0x214   : > { %v422_v22 = vpop.f32.mrf.mxu0 }
 0x215   : > { %v548_v23 = vpack.c.bf16 %v422_v22, %v422_v22 }
 0x217   : > { %1334 = vmatmul.msk.bf16.vlgmr.msrb.gmra.mxu0 %vm358_vm1, %v548_v23 }
 0x218   : > { %876 = vmatpush.bf16.msrb.mxu0 %v867_v24 }
 0x21c   : > { %v424_v25 = vpop.f32.mrf.mxu0 }
 0x224   : > { %v518_v27 = vpop.f32.mrf.mxu0 }
 0x225   : > { %v552_v28 = vpack.c.bf16 %v518_v27, %v518_v27 }
 0x227   : > { %1338 = vmatmul.msk.bf16.vlgmr.msra.gmra.mxu0 %vm358_vm1, %v552_v28 }
 0x22c   : > { %v520_v30 = vpop.f32.mrf.mxu0 }
 0x232   : > { %v398_v32 = vpop.f32.mrf.mxu3 }
 0x233   : > { %v547_v34 = vpack.c.bf16 %v398_v32, %v398_v32 }
 0x234   : > { %v446_v37 = vpop.f32.mrf.mxu1 }
 0x235   : > { %v549_v39 = vpack.c.bf16 %v446_v37, %v446_v37  ;;  %1333 = vmatmul.msk.bf16.vlgmr.msra.gmra.mxu3 %vm358_vm1, %v547_v34 }
 0x236   : > { %855 = vmatpush.bf16.msra.mxu3 %v846_v38 }
 0x237   : > { %1335 = vmatmul.msk.bf16.vlgmr.msrb.gmra.mxu1 %vm358_vm1, %v549_v39 }
 0x23a   : > { %v400_v42 = vpop.f32.mrf.mxu3 }
 0x23c   : > { %v448_v43 = vpop.f32.mrf.mxu1 }
 0x242   : > { %v494_v45 = vpop.f32.mrf.mxu3 }
 0x243   : > { %v374_v46 = vpop.f32.mrf.mxu2  ;;  %v551_v47 = vpack.c.bf16 %v494_v45, %v494_v45 }
 0x244   : > { %v546_v48 = vpack.c.bf16 %v374_v46, %v374_v46  ;;  %v542_v49 = vpop.f32.mrf.mxu1 }
 0x245   : > { %v553_v50 = vpack.c.bf16 %v542_v49, %v542_v49  ;;  %1337 = vmatmul.msk.bf16.vlgmr.msrb.gmra.mxu3 %vm358_vm1, %v551_v47 }
 0x246   : > { %1332 = vmatmul.msk.bf16.vlgmr.msra.gmra.mxu2 %vm358_vm1, %v546_v48 }
 0x247   : > { %1339 = vmatmul.msk.bf16.vlgmr.msra.gmra.mxu1 %vm358_vm1, %v553_v50 }
 0x24a   : > { %v496_v51 = vpop.f32.mrf.mxu3 }
 0x24b   : > { %v376_v52 = vpop.f32.mrf.mxu2 }
 0x24c   : > { %v544_v53 = vpop.f32.mrf.mxu1 }
 0x253   : > { %v470_v54 = vpop.f32.mrf.mxu2 }
 0x254   : > { %v550_v55 = vpack.c.bf16 %v470_v54, %v470_v54 }
 0x256   : > { %1336 = vmatmul.msk.bf16.vlgmr.msrb.gmra.mxu2 %vm358_vm1, %v550_v55 }
 0x25b   : > { %v472_v56 = vpop.f32.mrf.mxu2 }
 0x294   : > { %v613_v57 = vpop.f32.mrf.mxu0 }
 0x295   : > { %v728_v58 = vsel %vm358_vm1, %v613_v57, -inf }
 0x296   : > { %729 = vmax.xlane.f32.xlu2 %v728_v58 }
 0x29c   : > { %v615_v59 = vpop.f32.mrf.mxu0 }
 0x29d   : > { %v235_v59 = vperm.slane %v232_v8, 2 }
 0x2a4   : > { %v1905_v60 = vpop.f32.mrf.mxu0 }
 0x2a5   : > { %v740_v18 = vsel %vm358_vm1, %v1905_v60, -inf }
 0x2ac   : > { %v699_v61 = vpop.f32.mrf.mxu0 }
 0x2ad   : > { %v239_v61 = vperm.slane %v235_v59, 0 }
 0x2af   : > { %v1962_v7 = vadd.f32 %v1895_v29, %v239_v61 }
 0x2b4   : > { %v634_v62 = vpop.f32.mrf.mxu1 }
 0x2b5   : > { %v731_v13 = vsel %vm358_vm1, %v634_v62, -inf }
 0x2b8   : > { %v592_v63 = vpop.f32.mrf.mxu3 }
 0x2b9   : > { %v725_v17 = vsel %vm358_vm1, %v592_v63, -inf }
 0x2bc   : > { %v636_v0 = vpop.f32.mrf.mxu1 }
 0x2c0   : > { %v594_v1 = vpop.f32.mrf.mxu3 }
 0x2c4   : > { %v1907_v2 = vpop.f32.mrf.mxu1 }
 0x2c5   : > { %v743_v3 = vsel %vm358_vm1, %v1907_v2, -inf }
 0x2c6   : > { %744 = vmax.xlane.f32.xlu2 %v743_v3 }
 0x2c8   : > { %v676_v4 = vpop.f32.mrf.mxu3 }
 0x2c9   : > { %v571_v5 = vpop.f32.mrf.mxu2  ;;  %v737_v10 = vsel %vm358_vm1, %v676_v4, -inf }
 0x2ca   : > { %v722_v6 = vsel %vm358_vm1, %v571_v5, -inf }
 0x2cb   : > { %723 = vmax.xlane.f32.xlu0 %v722_v6 }
 0x2cc   : > { %v720_v9 = vpop.f32.mrf.mxu1 }
 0x2ce   : > { %738 = vmax.xlane.f32.xlu2 %v737_v10 }
 0x2d0   : > { %v678_v11 = vpop.f32.mrf.mxu3 }
 0x2d1   : > { %v573_v12 = vpop.f32.mrf.mxu2 }
 0x2d3   : > { %732 = vmax.xlane.f32.xlu0 %v731_v13 }
 0x2d9   : > { %v1914_v14 = vpop.f32.mrf.mxu2 }
 0x2da   : > { %v734_v15 = vsel %vm358_vm1, %v1914_v14, -inf }
 0x2db   : > { %735 = vmax.xlane.f32.xlu1 %v734_v15 }
 0x2e1   : > { %v657_v16 = vpop.f32.mrf.mxu2 }
 0x2e3   : > { %726 = vmax.xlane.f32.xlu1 %v725_v17 }
 0x2e7   : > { %924 = vrot.lane.b32.xlu0 %v1822_v36, %s1654_s29 }
 0x2eb   : > { %741 = vmax.xlane.f32.xlu1 %v740_v18 }
 0x304   : > { %882 = vrot.lane.b32.xlu1 %v1820_v35, %s1654_s29 }
 0x309   : > { %v730_v19 = vpop.xlane.xlu2 %729 }
 0x30a   : > { %v748_v23 = vsub.f32 %v613_v57, %v730_v19 }
 0x30c   : > { %v758_v25 = vmul.f32 1.442695, %v748_v23 }
 0x339   : > { %v745_v20 = vpop.xlane.xlu2 %744 }
 0x33a   : > { %v753_v8 = vsub.f32 %v1907_v2, %v745_v20 }
 0x33e   : > { %v724_v21 = vpop.xlane.xlu0 %723 }
 0x33f   : > { %v746_v22 = vsub.f32 %v571_v5, %v724_v21 }
 0x341   : > { %v754_v24 = vmul.f32 1.442695, %v746_v22  ;;  %v739_v27 = vpop.xlane.xlu2 %738 }
 0x342   : > { %v751_v36 = vsub.f32 %v676_v4, %v739_v27 }
 0x343   : > { %1449 = vpow2.f32 %v754_v24 }
 0x344   : > { %1451 = vpow2.f32 %v758_v25  ;;  %v764_v35 = vmul.f32 1.442695, %v751_v36 }
 0x346   : > { %v733_v28 = vpop.xlane.xlu0 %732 }
 0x347   : > { %v749_v30 = vsub.f32 %v634_v62, %v733_v28 }
 0x349   : > { %v1925_v31 = vpop.eup %1449  ;;  %v760_v32 = vmul.f32 1.442695, %v749_v30 }
 0x34a   : > { %v770_v34 = vsel %vm358_vm1, %v1925_v31, 0.0  ;;  %v1929_v38 = vpop.eup %1451 }
 0x34b   : > { %1453 = vpow2.f32 %v760_v32  ;;  %771 = vadd.xlane.f32.xlu1 %v770_v34  ;;  %v776_v43 = vsel %vm358_vm1, %v1929_v38, 0.0 }
 0x34c   : > { %1455 = vpow2.f32 %v764_v35 }
 0x34e   : > { %v736_v37 = vpop.xlane.xlu1 %735 }
 0x351   : > { %v1454_v39 = vpop.eup %1453 }
 0x352   : > { %v779_v42 = vsel %vm358_vm1, %v1454_v39, 0.0  ;;  %v1934_v46 = vpop.eup %1455 }
 0x353   : > { %780 = vadd.xlane.f32.xlu2 %v779_v42  ;;  %777 = vadd.xlane.f32.xlu1 %v776_v43  ;;  %v785_v51 = vsel %vm358_vm1, %v1934_v46, 0.0 }
 0x356   : > { %v727_v45 = vpop.xlane.xlu1 %726 }
 0x357   : > { %v747_v47 = vsub.f32 %v592_v63, %v727_v45  ;;  %v1951_v63 = vadd.f32 %v1892_v26, %v239_v61 }
 0x359   : > { %v756_v48 = vmul.f32 1.442695, %v747_v47  ;;  %v925_v49 = vpop.permute.xlu0 %924  ;;  %v345_v47 = vpack.c.bf16 %v1951_v63, %v1951_v63 }
 0x35a   : > { %v930_v50 = vsel %vm823_vm2, %v925_v49, 0 }
 0x35b   : > { %1457 = vpow2.f32 %v756_v48  ;;  %939 = vmatpush.bf16.msrb.mxu3 %v930_v50  ;;  %786 = vadd.xlane.f32.xlu1 %v785_v51 }
 0x35e   : > { %v742_v52 = vpop.xlane.xlu1 %741 }
 0x35f   : > { %v752_v53 = vsub.f32 %v1905_v60, %v742_v52 }
 0x361   : > { %v1458_v54 = vpop.eup %1457  ;;  %v766_v55 = vmul.f32 1.442695, %v752_v53  ;;  %v999_v53 = vsel %vm823_vm2, %v345_v47, 0 }
 0x362   : > { %v773_v56 = vsel %vm358_vm1, %v1458_v54, 0.0 }
 0x363   : > { %1459 = vpow2.f32 %v766_v55  ;;  %774 = vadd.xlane.f32.xlu2 %v773_v56 }
 0x369   : > { %v1941_v57 = vpop.eup %1459 }
 0x36a   : > { %v788_v58 = vsel %vm358_vm1, %v1941_v57, 0.0 }
 0x36b   : > { %789 = vadd.xlane.f32.xlu0 %v788_v58 }
 0x374   : > { %818 = vrot.lane.b32.xlu1 %v1836_v41, %s1654_s29  ;;  %v768_v41 = vmul.f32 1.442695, %v753_v8 }
 0x376   : > { %v883_v60 = vpop.permute.xlu1 %882  ;;  %1461 = vpow2.f32 %v768_v41 }
 0x377   : > { %v888_v62 = vsel %vm823_vm2, %v883_v60, 0 }
 0x378   : > { %897 = vmatpush.bf16.msrb.mxu1 %v888_v62 }
 0x37b   : > { %966 = vrot.lane.b32.xlu2 %v1834_v40, %s1654_s29  ;;  %v750_v40 = vsub.f32 %v1914_v14, %v736_v37 }
 0x37c   : > { %327 = vrot.lane.b32.xlu1 %v1951_v63, %s1650_s23  ;;  %v1968_v0 = vpop.eup %1461 }
 0x37d   : > { %v762_v26 = vmul.f32 1.442695, %v750_v40 }
 0x37f   : > { %945 = vrot.lane.b32.xlu0 %v1816_v33, %s1654_s29  ;;  %1463 = vpow2.f32 %v762_v26  ;;  %v791_v33 = vsel %vm358_vm1, %v1968_v0, 0.0 }
 0x384   : > { %339 = vrot.lane.b32.xlu1 %v1951_v63, %s1651_s26 }
 0x385   : > { %v1972_v1 = vpop.eup %1463 }
 0x386   : > { %v782_v29 = vsel %vm358_vm1, %v1972_v1, 0.0 }
 0x38c   : > { %335 = vrot.lane.b32.xlu1 %v1962_v7, %s1649_s18 }
 0x3a4   : > { %792 = vadd.xlane.f32.xlu2 %v791_v33 }
 0x3a9   : > { %783 = vadd.xlane.f32.xlu0 %v782_v29 }
 0x3bc   : > { %903 = vrot.lane.b32.xlu2 %v1845_v44, %s1654_s29 }
 0x3be   : > { %v772_v2 = vpop.xlane.xlu1 %771 }
 0x3c4   : > { %333 = vrot.lane.b32.xlu2 %v1951_v63, %s1649_s18  ;;  %s1585_s18 = sshra.s32 %s1197_s30, 4  ;;  %s1586_s18 = int_to_ptr.hbm [resolvable:$true] %s1585_s18 }
 0x3c5   : > { %p1592_p11 = scmp.lt.s32.totalorder %s1586_s18, %s2070_s3 }
 0x3c6   : > { %v781_v3 = vpop.xlane.xlu2 %780  ;;  %v778_v4 = vpop.xlane.xlu1 %777 }
 0x3c7   : > { %1465 = vrcp.f32 %v781_v3 }
 0x3c8   : > { %1467 = vrcp.f32 %v778_v4 }
 0x3cc   : > { %329 = vrot.lane.b32.xlu2 %v1962_v7, %s1650_s23  ;;  %s1587_s23 = scalar_lea.hbm %s1586_s18, 16 }
 0x3cd   : > { %v1466_v5 = vpop.eup %1465  ;;  %p1588_p1 = scmp.ne.s32.totalorder %s1586_s18, %s1587_s23  ;;  %p1593_p2 = scmp.lt.s32.totalorder %s1591_s28, %s1587_s23 }
 0x3ce   : > { %v1468_v6 = vpop.eup %1467  ;;  %v805_v9 = vmul.f32 %v1466_v5, %v1454_v39  ;;  %v787_v14 = vpop.xlane.xlu1 %786 }
 0x3cf   : > { %v804_v10 = vmul.f32 %v1468_v6, %v1929_v38  ;;  %p1589_p4 = pnand %p1588_p1, %p1745_p3  ;;  %p1594_p9 = por %p1593_p2, %p1592_p11 }
 0x3d0   : > { %v813_v11 = vpack.c.bf16 %v805_v9, %v805_v9 }
 0x3d1   : > { %v812_v12 = vpack.c.bf16 %v804_v10, %v804_v10  ;;  %p1590_p8 = pneg %p1589_p4 }
 0x3d2   : > { %1343 = vmatmul.msk.bf16.vlgmr.msrb.gmra.mxu1 %vm358_vm1, %v813_v11 }
 0x3d3   : > { %1342 = vmatmul.msk.bf16.vlgmr.msrb.gmra.mxu0 %vm358_vm1, %v812_v12  ;;  %p1595_p10 = pnand %p1594_p9, %p1590_p8 }
 0x3d4   : > { %341 = vrot.lane.b32.xlu2 %v1962_v7, %s1651_s26 }
 0x3d6   : > { %v775_v44 = vpop.xlane.xlu2 %774 }
 0x3d7   : > { %1469 = vrcp.f32 %v775_v44 }
 0x3d8   : > { %1471 = vrcp.f32 %v772_v2 }
 0x3d9   : > { %1473 = vrcp.f32 %v787_v14 }
 0x3dd   : > { %v1470_v13 = vpop.eup %1469 }
 0x3de   : > { %v803_v15 = vmul.f32 %v1470_v13, %v1458_v54  ;;  %v967_v16 = vpop.permute.xlu2 %966  ;;  %v1472_v19 = vpop.eup %1471 }
 0x3df   : > { %v972_v17 = vsel %vm823_vm2, %v967_v16, 0  ;;  %v790_v20 = vpop.xlane.xlu0 %789  ;;  %v802_v21 = vmul.f32 %v1472_v19, %v1925_v31  ;;  %v1474_v24 = vpop.eup %1473 }
 0x3e0   : > { %v811_v18 = vpack.c.bf16 %v803_v15, %v803_v15  ;;  %981 = vmatpush.bf16.msra.mxu1 %v972_v17  ;;  %1475 = vrcp.f32 %v790_v20  ;;  %v807_v27 = vmul.f32 %v1474_v24, %v1934_v46 }
 0x3e1   : > { %v810_v25 = vpack.c.bf16 %v802_v21, %v802_v21 }
 0x3e2   : > { %1341 = vmatmul.msk.bf16.vlgmr.msra.gmra.mxu3 %vm358_vm1, %v811_v18  ;;  %v815_v32 = vpack.c.bf16 %v807_v27, %v807_v27 }
 0x3e6   : > { %v819_v22 = vpop.permute.xlu1 %818  ;;  %v1476_v28 = vpop.eup %1475 }
 0x3e7   : > { %v825_v23 = vsel %vm823_vm2, %v819_v22, 0  ;;  %v808_v34 = vmul.f32 %v1476_v28, %v1941_v57  ;;  %v349_v57 = vpack.c.bf16 %v1962_v7, %v1962_v7 }
 0x3e8   : > { %834 = vmatpush.bf16.msra.mxu2 %v825_v23 }
 0x3e9   : > { %v816_v38 = vpack.c.bf16 %v808_v34, %v808_v34  ;;  %v1075_v62 = vsel %vm823_vm2, %v349_v57, 0 }
 0x3eb   : > { %1340 = vmatmul.msk.bf16.vlgmr.msra.gmra.mxu2 %vm358_vm1, %v810_v25 }
 0x3ee   : > { %v328_v30 = vpop.permute.xlu1 %327 }
 0x3ef   : > { %v346_v36 = vpack.c.bf16 %v328_v30, %v328_v30 }
 0x3f1   : > { %v1018_v35 = vsel %vm823_vm2, %v346_v36, 0  ;;  %v946_v31 = vpop.permute.xlu0 %945 }
 0x3f2   : > { %v951_v37 = vsel %vm823_vm2, %v946_v31, 0  ;;  %1345 = vmatmul.msk.bf16.vlgmr.msrb.gmra.mxu3 %vm358_vm1, %v815_v32 }
 0x3f3   : > { %1027 = vmatpush.bf16.msra.mxu3 %v1018_v35  ;;  %960 = vmatpush.bf16.msra.mxu0 %v951_v37 }
 0x3f6   : > { %1346 = vmatmul.msk.bf16.vlgmr.msra.gmra.mxu0 %vm358_vm1, %v816_v38  ;;  %v340_v39 = vpop.permute.xlu1 %339 }
 0x3f7   : > { %v348_v42 = vpack.c.bf16 %v340_v39, %v340_v39 }
 0x3f9   : > { %v1056_v43 = vsel %vm823_vm2, %v348_v42, 0 }
 0x3fa   : > { %1065 = vmatpush.bf16.msrb.mxu1 %v1056_v43 }
 0x3fe   : > { %v336_v55 = vpop.permute.xlu1 %335 }
 0x3ff   : > { %v351_v59 = vpack.c.bf16 %v336_v55, %v336_v55 }
 0x401   : > { %v1113_v8 = vsel %vm823_vm2, %v351_v59, 0 }
 0x417   : > { %v793_v45 = vpop.xlane.xlu2 %792 }
 0x418   : > { %1477 = vrcp.f32 %v793_v45 }
 0x41c   : > { %v784_v46 = vpop.xlane.xlu0 %783 }
 0x41d   : > { %1479 = vrcp.f32 %v784_v46 }
 0x41e   : > { %v1478_v48 = vpop.eup %1477 }
 0x41f   : > { %v809_v49 = vmul.f32 %v1478_v48, %v1968_v0  ;;  %v904_v50 = vpop.permute.xlu2 %903 }
 0x420   : > { %v909_v51 = vsel %vm823_vm2, %v904_v50, 0 }
 0x421   : > { %v817_v52 = vpack.c.bf16 %v809_v49, %v809_v49  ;;  %918 = vmatpush.bf16.msrb.mxu2 %v909_v51 }
 0x423   : > { %v1480_v54 = vpop.eup %1479  ;;  %1347 = vmatmul.msk.bf16.vlgmr.msra.gmra.mxu1 %vm358_vm1, %v817_v52 }
 0x424   : > { %v806_v56 = vmul.f32 %v1480_v54, %v1972_v1 }
 0x425   : > { %1008 = vmatpush.bf16.msra.mxu2 %v999_v53 }
 0x426   : > { %v814_v58 = vpack.c.bf16 %v806_v56, %v806_v56 }
 0x427   : > { %v334_v61 = vpop.permute.xlu2 %333 }
 0x428   : > { %v347_v60 = vpack.c.bf16 %v334_v61, %v334_v61  ;;  %1344 = vmatmul.msk.bf16.vlgmr.msrb.gmra.mxu2 %vm358_vm1, %v814_v58 }
 0x429   : > { %1084 = vmatpush.bf16.msrb.mxu2 %v1075_v62 }
 0x42a   : > { %v1037_v63 = vsel %vm823_vm2, %v347_v60, 0 }
 0x42b   : > { %1046 = vmatpush.bf16.msrb.mxu0 %v1037_v63 }
 0x42f   : > { %1122 = vmatpush.bf16.msra.mxu0 %v1113_v8  ;;  %v330_v41 = vpop.permute.xlu2 %329 }
 0x430   : > { %v350_v40 = vpack.c.bf16 %v330_v41, %v330_v41 }
 0x432   : > { %v1094_v26 = vsel %vm823_vm2, %v350_v40, 0 }
 0x433   : > { %1103 = vmatpush.bf16.msrb.mxu3 %v1094_v26 }
 0x437   : > { %v342_v7 = vpop.permute.xlu2 %341 }
 0x438   : > { %v352_v0 = vpack.c.bf16 %v342_v7, %v342_v7 }
 0x43a   : > { %v1132_v33 = vsel %vm823_vm2, %v352_v0, 0 }
 0x43b   : > { %1141 = vmatpush.bf16.msra.mxu1 %v1132_v33 }
 0x44f   : > { %v899_v1 = vpop.f32.mrf.mxu1 }
 0x450   : > { %v878_v29 = vpop.f32.mrf.mxu0  ;;  %v990_v2 = vpack.c.bf16 %v899_v1, %v899_v1 }
 0x451   : > { %v989_v3 = vpack.c.bf16 %v878_v29, %v878_v29 }
 0x452   : > { %1351 = vmatmul.msk.bf16.vlgmr.msrb.gmra.mxu1 %vm358_vm1, %v990_v2 }
 0x453   : > { %1350 = vmatmul.msk.bf16.vlgmr.msrb.gmra.mxu0 %vm358_vm1, %v989_v3 }
 0x457   : > { %v901_v4 = vpop.f32.mrf.mxu1 }
 0x458   : > { %v880_v5 = vpop.f32.mrf.mxu0 }
 0x465   : > { %v857_v6 = vpop.f32.mrf.mxu3 }
 0x466   : > { %v988_v9 = vpack.c.bf16 %v857_v6, %v857_v6 }
 0x468   : > { %1349 = vmatmul.msk.bf16.vlgmr.msra.gmra.mxu3 %vm358_vm1, %v988_v9 }
 0x46d   : > { %v859_v10 = vpop.f32.mrf.mxu3 }
 0x46e   : > { %v836_v11 = vpop.f32.mrf.mxu2 }
 0x46f   : > { %v987_v12 = vpack.c.bf16 %v836_v11, %v836_v11 }
 0x471   : > { %1348 = vmatmul.msk.bf16.vlgmr.msra.gmra.mxu2 %vm358_vm1, %v987_v12 }
 0x473   : > { %v962_v44 = vpop.f32.mrf.mxu0 }
 0x474   : > { %v993_v13 = vpack.c.bf16 %v962_v44, %v962_v44 }
 0x475   : > { %v941_v14 = vpop.f32.mrf.mxu3 }
 0x476   : > { %v992_v15 = vpack.c.bf16 %v941_v14, %v941_v14  ;;  %v838_v16 = vpop.f32.mrf.mxu2  ;;  %1354 = vmatmul.msk.bf16.vlgmr.msra.gmra.mxu0 %vm358_vm1, %v993_v13 }
 0x478   : > { %1353 = vmatmul.msk.bf16.vlgmr.msrb.gmra.mxu3 %vm358_vm1, %v992_v15 }
 0x47b   : > { %v964_v17 = vpop.f32.mrf.mxu0 }
 0x47d   : > { %v943_v18 = vpop.f32.mrf.mxu3 }
 0x4a0   : > { %v983_v19 = vpop.f32.mrf.mxu1 }
 0x4a1   : > { %v994_v20 = vpack.c.bf16 %v983_v19, %v983_v19 }
 0x4a3   : > { %1355 = vmatmul.msk.bf16.vlgmr.msra.gmra.mxu1 %vm358_vm1, %v994_v20 }
 0x4a8   : > { %v985_v21 = vpop.f32.mrf.mxu1 }
 0x4ab   : > { %v920_v22 = vpop.f32.mrf.mxu2 }
 0x4ac   : > { %v991_v23 = vpack.c.bf16 %v920_v22, %v920_v22 }
 0x4ae   : > { %1352 = vmatmul.msk.bf16.vlgmr.msrb.gmra.mxu2 %vm358_vm1, %v991_v23 }
 0x4b3   : > { %v922_v24 = vpop.f32.mrf.mxu2 }
 0x4cf   : > { %v1067_v25 = vpop.f32.mrf.mxu1 }
 0x4d0   : > { %v1048_v27 = vpop.f32.mrf.mxu0 }
 0x4d1   : > { %1157 = vrot.lane.b32.xlu2 %v1048_v27, %s1655_s4 }
 0x4d7   : > { %v1069_v28 = vpop.f32.mrf.mxu1 }
 0x4d8   : > { %v1050_v30 = vpop.f32.mrf.mxu0 }
 0x4d9   : > { %1165 = vrot.lane.b32.xlu2 %v1067_v25, %s1656_s5 }
 0x4eb   : > { %v1029_v36 = vpop.f32.mrf.mxu3 }
 0x4ec   : > { %1149 = vrot.lane.b32.xlu0 %v1029_v36, %s1657_s7 }
 0x4f3   : > { %v1031_v32 = vpop.f32.mrf.mxu3  ;;  %v1124_v34 = vpop.f32.mrf.mxu0 }
 0x4f4   : > { %1159 = vrot.lane.b32.xlu1 %v1124_v34, %s1655_s4  ;;  %v1010_v35 = vpop.f32.mrf.mxu2 }
 0x4fb   : > { %v1105_v31 = vpop.f32.mrf.mxu3  ;;  %v1126_v37 = vpop.f32.mrf.mxu0 }
 0x4fc   : > { %1151 = vrot.lane.b32.xlu1 %v1105_v31, %s1657_s7  ;;  %v1012_v38 = vpop.f32.mrf.mxu2 }
 0x503   : > { %v1107_v39 = vpop.f32.mrf.mxu3 }
 0x520   : > { %v1143_v42 = vpop.f32.mrf.mxu1 }
 0x521   : > { %1167 = vrot.lane.b32.xlu1 %v1143_v42, %s1656_s5 }
 0x528   : > { %v1145_v43 = vpop.f32.mrf.mxu1 }
 0x52b   : > { %v1158_v47 = vpop.permute.xlu2 %1157 }
 0x531   : > { %v1086_v45 = vpop.f32.mrf.mxu2 }
 0x533   : > { %v1166_v50 = vpop.permute.xlu2 %1165 }
 0x539   : > { %v1088_v46 = vpop.f32.mrf.mxu2 }
 0x55e   : > { %v1150_v48 = vpop.permute.xlu0 %1149 }
 0x55f   : > { %v1171_v49 = vsel %vm358_vm1, %v1010_v35, %v1150_v48 }
 0x560   : > { %v1174_v51 = vsel %vm1173_vm3, %v1171_v49, %v1158_v47 }
 0x561   : > { %v1177_v52 = vsel %vm1176_vm4, %v1174_v51, %v1166_v50 }
 0x562   : > { %1179 = vst.msk [vmem:[%s221_s17] sm:$0xff] %vm265_vm0, %v1177_v52 }
 0x566   : > { %v1160_v53 = vpop.permute.xlu1 %1159 }
 0x56e   : > { %v1152_v54 = vpop.permute.xlu1 %1151 }
 0x56f   : > { %v1172_v55 = vsel %vm358_vm1, %v1086_v45, %v1152_v54 }
 0x570   : > { %v1175_v57 = vsel %vm1173_vm3, %v1172_v55, %v1160_v53 }
 0x593   : > { %v1168_v56 = vpop.permute.xlu1 %1167 }
 0x594   : > { %v1178_v58 = vsel %vm1176_vm4, %v1175_v57, %v1168_v56 }
 0x595   : > { %1180 = vst.msk [vmem:[%s221_s17 + $0x8] sm:$0xff] %vm265_vm0, %v1178_v58 }
 0x596   : > { %1598 = shalt.err (!%p1595_p10)
}
 0x597   : > { %s1658_s22 = smov 128  }
 0x598   : > { %1378 = dma.vmem_to_hbm [thread:$0]  (%p1745_p3), %s1195_s25, 256, %s1197_s30, %s1182_s16, %s1658_s22, %s1658_s22, %s1657_s7  }
 0x599 PF: > { %s1211_s5 = sand.u32 1, %s1629_s12   ;;  %p2076_p12 = scmp.ge.s32.totalorder %s1641_s15, 2 }
 0x59a   : > { %s1212_s8 = scalar_lea.sflag [#allocation4], %s1211_s5 }
 0x59b   : > { %p1392_p13 = pnand %p2076_p12, %p1714_p6 }
 0x59d   : > { %p1393_p0 = pneg %p1392_p13 }
 0x59f   : > { %1624 = dma.done.wait (%p1393_p0), %s1212_s8, 256  }
 0x5a0   : > { %1626 = vsyncadd (%p1393_p0), %s1212_s8, 4294967040  ;;  %p17_p5 = scmp.ge.s32.totalorder %s1735_s6, 4   ;;  %s2077_s12 = smov %s1633_s13 }
 0x5a1   : > { %s2078_s13 = smov %s1637_s14  ;;  %s2079_s14 = smov %s1751_s10 }
 0x5a2   : > { %s2080_s15 = smov %s1735_s6  ;;  %19 = sbr.rel (!%p17_p5) target bundleno = 6 (0x6), region = 85 }
 0x5a7   :  { %1218 = vsyncpa [#allocation3], 1 }
 0x5a8   :  { %1220 = vsyncpa [#allocation3 + $0x1], 1 }
 0x5a9   :  { %1221 = vsyncpa [#allocation6], 1 }
 0x5aa   :  { %1222 = vsyncpa [#allocation4], 1 }
 0x5ab   :  { %1224 = vsyncpa [#allocation4 + $0x1], 1 }

</bundles_post_ra>
